<compile_context>
chip_gen: v7x
topology: tpu7x:2x2x1
jax: 0.10.0
libtpu: 0.0.40
codegen_flags: <defaults>
</compile_context>

<pallas_src>
import math
from functools import partial

import jax
import jax.numpy as jnp
from jax import lax
from jax.experimental import pallas as pl
from jax.experimental.pallas import tpu as pltpu


_LN_EPS = 1e-5                      # torch.nn.LayerNorm default eps
_SQRT_HALF = 1.0 / math.sqrt(2.0)


def _round_up(a, b):
    return (a + b - 1) // b * b


def _vmem_limit(total_block_bytes):
    # double-buffered blocks + headroom, clamped so the request is also valid
    # on v7x (64 MiB physical VMEM); v5e/v6e have 128 MiB so this is safe there.
    want = 2 * total_block_bytes + (4 << 20)
    return int(min(64 << 20, max(want, 16 << 20)))


def _layer_norm_f32(x, gamma, beta, eps=_LN_EPS):
    mu = jnp.mean(x, axis=-1, keepdims=True)
    xc = x - mu
    var = jnp.mean(xc * xc, axis=-1, keepdims=True)
    return xc * lax.rsqrt(var + eps) * gamma + beta


def _erf_poly_f32(x):
    # Abramowitz & Stegun 7.1.26, |error| <= 1.5e-7: preserves torch's exact
    # (erf-based) GELU semantics using only exp / mul / add (safe to lower).
    a1, a2, a3, a4, a5 = (0.254829592, -0.284496736, 1.421413741,
                          -1.453152027, 1.061405429)
    p = 0.3275911
    ax = jnp.abs(x)
    t = 1.0 / (1.0 + p * ax)
    poly = t * (a1 + t * (a2 + t * (a3 + t * (a4 + t * a5))))
    y = 1.0 - poly * jnp.exp(-ax * ax)
    return jnp.where(x >= 0.0, y, -y)


def _gelu_exact_kernel(x):
    return 0.5 * x * (1.0 + _erf_poly_f32(x * _SQRT_HALF))


def _gelu_exact_ref(x):
    return 0.5 * x * (1.0 + lax.erf(x * _SQRT_HALF))


# --------------------------------------------------------------------------
# Kernel 1: q = LayerNorm1(x) @ Wq      (row-tiled; qkv_bias=False)
# --------------------------------------------------------------------------
def _ln_q_kernel(x_ref, g_ref, b_ref, wq_ref, q_ref, *, compute_dtype):
    x = x_ref[...].astype(jnp.float32)
    xn = _layer_norm_f32(x, g_ref[...].astype(jnp.float32),
                         b_ref[...].astype(jnp.float32))
    q = jnp.dot(xn.astype(compute_dtype), wq_ref[...].astype(compute_dtype),
                preferred_element_type=jnp.float32)
    q_ref[...] = q.astype(q_ref.dtype)


# --------------------------------------------------------------------------
# Kernel 2: per-(batch, head) attention against externally supplied k / v
#   k is passed pre-transposed as (B, heads, hd, Nk) so no in-kernel transpose.
# --------------------------------------------------------------------------
def _head_attn_kernel(q_ref, kt_ref, v_ref, o_ref, *, scale, compute_dtype):
    q = q_ref[0, 0].astype(compute_dtype)      # (N, hd)
    kt = kt_ref[0, 0].astype(compute_dtype)    # (hd, Nk)
    v = v_ref[0, 0].astype(compute_dtype)      # (Nk, hd)
    s = jnp.dot(q, kt, preferred_element_type=jnp.float32) * scale   # (N, Nk)
    s = s - jnp.max(s, axis=-1, keepdims=True)
    p = jnp.exp(s)
    p = p / jnp.sum(p, axis=-1, keepdims=True)        # softmax, f32
    # attn_drop(p=0.0) == identity
    o = jnp.dot(p.astype(compute_dtype), v, preferred_element_type=jnp.float32)
    o_ref[0, 0] = o.astype(o_ref.dtype)


# --------------------------------------------------------------------------
# Kernel 3: proj + (a + a) + LayerNorm2 + MLP (fc1 -> exact GELU -> fc2) + res
# --------------------------------------------------------------------------
def _proj_mlp_kernel(ao_ref, wp_ref, bp_ref, g2_ref, b2_ref,
                     w1_ref, c1_ref, w2_ref, c2_ref, o_ref, *, compute_dtype):
    ao = ao_ref[...].astype(compute_dtype)                         # (tm, C)
    y = jnp.dot(ao, wp_ref[...].astype(compute_dtype),
                preferred_element_type=jnp.float32)
    y = y + bp_ref[...].astype(jnp.float32)
    # proj_drop(p=0.0) == identity;  x = attn_out + DropPath(attn_out) == 2*a
    y1 = y + y
    yn = _layer_norm_f32(y1, g2_ref[...].astype(jnp.float32),
                         b2_ref[...].astype(jnp.float32))
    h = jnp.dot(yn.astype(compute_dtype), w1_ref[...].astype(compute_dtype),
                preferred_element_type=jnp.float32)
    h = h + c1_ref[...].astype(jnp.float32)
    h = _gelu_exact_kernel(h)
    # Dropout(p=0.0) == identity
    m = jnp.dot(h.astype(compute_dtype), w2_ref[...].astype(compute_dtype),
                preferred_element_type=jnp.float32)
    m = m + c2_ref[...].astype(jnp.float32)
    o_ref[...] = (y1 + m).astype(o_ref.dtype)


# --------------------------------------------------------------------------
# Wrapper
# --------------------------------------------------------------------------
def block2_forward(x, k, v, params, *, tm=256, use_bf16=True):
    """Block2 forward.  x: (B, N, C) f32; k, v: (B, heads, Nk, hd), hd = C//heads.

    Weights are stored pre-transposed relative to nn.Linear:
      wq, wp: (C, C);  w1: (C, H);  w2: (H, C).
    """
    B, N, C = x.shape
    heads, Nk, hd = k.shape[1], k.shape[2], k.shape[3]
    assert heads * hd == C, "k/v head_dim must satisfy heads * hd == C"
    H = params["w1"].shape[1]
    compute_dtype = jnp.bfloat16 if use_bf16 else jnp.float32
    cb = jnp.dtype(compute_dtype).itemsize
    f4 = 4
    scale = hd ** (-0.5)            # qk_scale=None -> head_dim ** -0.5

    # Large row tiles amortize the ~600-cycle per-grid-step overhead and keep
    # the MXU fed; pad M so every tile is full (no ragged masked stores).
    M = B * N
    tm = _round_up(max(8, min(tm, M)), 8)
    Mp = _round_up(M, tm)

    x2d = x.reshape(M, C)
    if Mp > M:
        x2d = jnp.pad(x2d, ((0, Mp - M), (0, 0)))

    # MXU operands in compute_dtype (bf16 fast path on v6e/v7x, halves weight
    # residency which matters on v7x's 64 MiB VMEM); accumulation stays f32.
    wq = params["wq"].astype(compute_dtype)
    wp = params["wp"].astype(compute_dtype)
    w1 = params["w1"].astype(compute_dtype)
    w2 = params["w2"].astype(compute_dtype)
    g1 = params["ln1_g"].reshape(1, C).astype(jnp.float32)
    b1 = params["ln1_b"].reshape(1, C).astype(jnp.float32)
    g2 = params["ln2_g"].reshape(1, C).astype(jnp.float32)
    b2 = params["ln2_b"].reshape(1, C).astype(jnp.float32)
    bp = params["proj_b"].reshape(1, C).astype(jnp.float32)
    c1 = params["mlp_b1"].reshape(1, H).astype(jnp.float32)
    c2 = params["mlp_b2"].reshape(1, C).astype(jnp.float32)

    # ---- K1: q = LN1(x) @ Wq ------------------------------------------------
    vmem1 = _vmem_limit(2 * tm * C * f4 + C * C * cb + 2 * C * f4)
    q2d = pl.pallas_call(
        partial(_ln_q_kernel, compute_dtype=compute_dtype),
        out_shape=jax.ShapeDtypeStruct((Mp, C), jnp.float32),
        grid=(Mp // tm,),
        in_specs=[
            pl.BlockSpec((tm, C), lambda i: (i, 0)),
            pl.BlockSpec((1, C), lambda i: (0, 0)),
            pl.BlockSpec((1, C), lambda i: (0, 0)),
            pl.BlockSpec((C, C), lambda i: (0, 0)),
        ],
        out_specs=pl.BlockSpec((tm, C), lambda i: (i, 0)),
        compiler_params=pltpu.CompilerParams(
            dimension_semantics=("parallel",), vmem_limit_bytes=vmem1),
    )(x2d, g1, b1, wq)
    q2d = q2d[:M]

    # Head split / k transpose are wrapper-side layout plumbing (XLA).
    qh = q2d.reshape(B, N, heads, hd).transpose(0, 2, 1, 3)     # (B, heads, N, hd)
    qh = qh.astype(compute_dtype)
    kt = k.transpose(0, 1, 3, 2).astype(compute_dtype)          # (B, heads, hd, Nk)
    vh = v.astype(compute_dtype)                                # (B, heads, Nk, hd)

    # ---- K2: per-(batch, head) softmax attention ----------------------------
    vmem2 = _vmem_limit((N * hd + hd * Nk + Nk * hd) * cb + N * hd * f4)
    ao = pl.pallas_call(
        partial(_head_attn_kernel, scale=scale, compute_dtype=compute_dtype),
        out_shape=jax.ShapeDtypeStruct((B, heads, N, hd), jnp.float32),
        grid=(B, heads),
        in_specs=[
            pl.BlockSpec((1, 1, N, hd), lambda b, h: (b, h, 0, 0)),
            pl.BlockSpec((1, 1, hd, Nk), lambda b, h: (b, h, 0, 0)),
            pl.BlockSpec((1, 1, Nk, hd), lambda b, h: (b, h, 0, 0)),
        ],
        out_specs=pl.BlockSpec((1, 1, N, hd), lambda b, h: (b, h, 0, 0)),
        compiler_params=pltpu.CompilerParams(
            dimension_semantics=("parallel", "parallel"), vmem_limit_bytes=vmem2),
    )(qh, kt, vh)

    ao2d = ao.transpose(0, 2, 1, 3).reshape(M, C)
    if Mp > M:
        ao2d = jnp.pad(ao2d, ((0, Mp - M), (0, 0)))

    # ---- K3: proj + (a + a) + LN2 + MLP + residual ---------------------------
    vmem3 = _vmem_limit(
        2 * tm * C * f4                        # ao tile + out tile
        + (C * C + C * H + H * C) * cb         # resident Wp, W1, W2
        + (4 * C + H) * f4)                    # biases / LN params
    out2d = pl.pallas_call(
        partial(_proj_mlp_kernel, compute_dtype=compute_dtype),
        out_shape=jax.ShapeDtypeStruct((Mp, C), x.dtype),
        grid=(Mp // tm,),
        in_specs=[
            pl.BlockSpec((tm, C), lambda i: (i, 0)),   # attention output rows
            pl.BlockSpec((C, C), lambda i: (0, 0)),    # Wp (resident)
            pl.BlockSpec((1, C), lambda i: (0, 0)),    # proj bias
            pl.BlockSpec((1, C), lambda i: (0, 0)),    # LN2 gamma
            pl.BlockSpec((1, C), lambda i: (0, 0)),    # LN2 beta
            pl.BlockSpec((C, H), lambda i: (0, 0)),    # W1 (resident)
            pl.BlockSpec((1, H), lambda i: (0, 0)),    # fc1 bias
            pl.BlockSpec((H, C), lambda i: (0, 0)),    # W2 (resident)
            pl.BlockSpec((1, C), lambda i: (0, 0)),    # fc2 bias
        ],
        out_specs=pl.BlockSpec((tm, C), lambda i: (i, 0)),
        compiler_params=pltpu.CompilerParams(
            dimension_semantics=("parallel",), vmem_limit_bytes=vmem3),
    )(ao2d, wp, bp, g2, b2, w1, c1, w2, c2)

    return out2d[:M].reshape(B, N, C)


# --------------------------------------------------------------------------
# Pure-JAX reference (mirrors the kernel's matmul-input dtype when requested)
# --------------------------------------------------------------------------
def block2_reference(x, k, v, params, *, use_bf16=False):
    cd = jnp.bfloat16 if use_bf16 else jnp.float32
    B, N, C = x.shape
    heads, Nk, hd = k.shape[1], k.shape[2], k.shape[3]
    scale = hd ** (-0.5)
    hp = lax.Precision.HIGHEST

    def mm(a, b):
        return jnp.dot(a.astype(cd), b.astype(cd),
                       preferred_element_type=jnp.float32, precision=hp)

    xn = _layer_norm_f32(x.astype(jnp.float32), params["ln1_g"], params["ln1_b"])
    q = mm(xn.reshape(B * N, C), params["wq"]).reshape(B, N, C)
    qh = q.reshape(B, N, heads, hd).transpose(0, 2, 1, 3)
    s = jnp.einsum("bhnd,bhkd->bhnk", qh.astype(cd), k.astype(cd),
                   preferred_element_type=jnp.float32, precision=hp) * scale
    s = s - jnp.max(s, axis=-1, keepdims=True)
    p = jnp.exp(s)
    p = p / jnp.sum(p, axis=-1, keepdims=True)
    o = jnp.einsum("bhnk,bhkd->bhnd", p.astype(cd), v.astype(cd),
                   preferred_element_type=jnp.float32, precision=hp)
    o = o.transpose(0, 2, 1, 3).reshape(B * N, C)
    a = mm(o, params["wp"]) + params["proj_b"]
    y1 = a + a
    yn = _layer_norm_f32(y1, params["ln2_g"], params["ln2_b"])
    h = mm(yn, params["w1"]) + params["mlp_b1"]
    h = _gelu_exact_ref(h)
    m = mm(h, params["w2"]) + params["mlp_b2"]
    return (y1 + m).reshape(B, N, C)


if __name__ == "__main__":
    # Small, lane-dense shapes consistent with Block2: dim=128, 8 heads,
    # head_dim=16, mlp_ratio=4 -> hidden=512, seq=16, batch=2, Nk=16.
    B, N, C, heads = 2, 16, 128, 8
    hd = C // heads
    Nk = N
    H = int(C * 4.0)

    key = jax.random.PRNGKey(0)
    ks = jax.random.split(key, 14)
    x = jax.random.normal(ks[0], (B, N, C), jnp.float32)
    k = jax.random.normal(ks[1], (B, heads, Nk, hd), jnp.float32)
    v = jax.random.normal(ks[2], (B, heads, Nk, hd), jnp.float32)
    params = dict(
        ln1_g=1.0 + 0.1 * jax.random.normal(ks[3], (C,), jnp.float32),
        ln1_b=0.1 * jax.random.normal(ks[4], (C,), jnp.float32),
        wq=jax.random.normal(ks[5], (C, C), jnp.float32) / math.sqrt(C),
        wp=jax.random.normal(ks[6], (C, C), jnp.float32) / math.sqrt(C),
        proj_b=0.02 * jax.random.normal(ks[7], (C,), jnp.float32),
        ln2_g=1.0 + 0.1 * jax.random.normal(ks[8], (C,), jnp.float32),
        ln2_b=0.1 * jax.random.normal(ks[9], (C,), jnp.float32),
        w1=jax.random.normal(ks[10], (C, H), jnp.float32) / math.sqrt(C),
        mlp_b1=0.02 * jax.random.normal(ks[11], (H,), jnp.float32),
        w2=jax.random.normal(ks[12], (H, C), jnp.float32) / math.sqrt(H),
        mlp_b2=0.02 * jax.random.normal(ks[13], (C,), jnp.float32),
    )

    # bf16 MXU fast path (v6e/v7x perf feedback), compared against a reference
    # that rounds matmul inputs identically -> tight agreement expected.
    y16 = jax.block_until_ready(block2_forward(x, k, v, params, use_bf16=True))
    r16 = jax.block_until_ready(block2_reference(x, k, v, params, use_bf16=True))
    assert y16.shape == (B, N, C)
    assert bool(jnp.all(jnp.isfinite(y16)))
    assert jnp.allclose(y16, r16, atol=5e-2, rtol=5e-2), "bf16 kernel mismatch"

    # f32 MXU path vs full-precision reference (looser: MXU f32 pass count may
    # differ from XLA's default matmul precision).
    y32 = jax.block_until_ready(block2_forward(x, k, v, params, use_bf16=False))
    r32 = jax.block_until_ready(block2_reference(x, k, v, params, use_bf16=False))
    assert jnp.allclose(y32, r32, atol=1.5e-1, rtol=1e-1), "f32 kernel mismatch"

    # Ragged-M path: a tm that does not divide M exercises the wrapper padding;
    # result must match the unpadded run (same per-row math, different tiling).
    y_pad = jax.block_until_ready(
        block2_forward(x, k, v, params, tm=24, use_bf16=False))
    assert jnp.allclose(y_pad, y32, atol=1e-3, rtol=1e-3), "padded-path mismatch"

    print("KERNEL_OK")
</pallas_src>

<mosaic_0001>
module attributes {stable_mosaic.version = 11 : i64} {
  func.func @_ln_q_kernel(%arg0: i32, %arg1: memref<32x128xf32, #tpu.memory_space<vmem>>, %arg2: memref<1x128xf32, #tpu.memory_space<vmem>>, %arg3: memref<1x128xf32, #tpu.memory_space<vmem>>, %arg4: memref<128x128xbf16, #tpu.memory_space<vmem>>, %arg5: memref<32x128xf32, #tpu.memory_space<vmem>>) attributes {dimension_semantics = [#tpu.dimension_semantics<parallel>], iteration_bounds = array<i64: 1>, scalar_prefetch = 0 : i64, scratch_operands = 0 : i64, tpu.core_type = #tpu.core_type<tc>, window_params = [{transform_indices = @transform_0, window_bounds = array<i64: 32, 128>}, {pipeline_mode = #tpu.pipeline_mode<synchronous>, transform_indices = @transform_1, window_bounds = array<i64: 1, 128>}, {pipeline_mode = #tpu.pipeline_mode<synchronous>, transform_indices = @transform_2, window_bounds = array<i64: 1, 128>}, {pipeline_mode = #tpu.pipeline_mode<synchronous>, transform_indices = @transform_3, window_bounds = array<i64: 128, 128>}, {transform_indices = @transform_4, window_bounds = array<i64: 32, 128>}]} {
    %c0 = arith.constant 0 : index
    %c0_0 = arith.constant 0 : index
    %0 = vector.load %arg1[%c0, %c0_0] : memref<32x128xf32, #tpu.memory_space<vmem>>, vector<32x128xf32>
    %c0_1 = arith.constant 0 : index
    %c0_2 = arith.constant 0 : index
    %1 = vector.load %arg2[%c0_1, %c0_2] : memref<1x128xf32, #tpu.memory_space<vmem>>, vector<1x128xf32>
    %c0_3 = arith.constant 0 : index
    %c0_4 = arith.constant 0 : index
    %2 = vector.load %arg3[%c0_3, %c0_4] : memref<1x128xf32, #tpu.memory_space<vmem>>, vector<1x128xf32>
    %cst = arith.constant dense<0.000000e+00> : vector<32xf32>
    %3 = vector.multi_reduction <add>, %0, %cst [1] : vector<32x128xf32> to vector<32xf32>
    %4 = vector.shape_cast %3 : vector<32xf32> to vector<32x1xf32>
    %cst_5 = arith.constant 1.280000e+02 : f32
    %5 = vector.broadcast %cst_5 : f32 to vector<32x1xf32>
    %6 = arith.divf %4, %5 : vector<32x1xf32>
    %7 = vector.broadcast %6 : vector<32x1xf32> to vector<32x128xf32>
    %8 = arith.subf %0, %7 : vector<32x128xf32>
    %9 = arith.mulf %8, %8 : vector<32x128xf32>
    %cst_6 = arith.constant dense<0.000000e+00> : vector<32xf32>
    %10 = vector.multi_reduction <add>, %9, %cst_6 [1] : vector<32x128xf32> to vector<32xf32>
    %11 = vector.shape_cast %10 : vector<32xf32> to vector<32x1xf32>
    %cst_7 = arith.constant 1.280000e+02 : f32
    %12 = vector.broadcast %cst_7 : f32 to vector<32x1xf32>
    %13 = arith.divf %11, %12 : vector<32x1xf32>
    %cst_8 = arith.constant 9.99999974E-6 : f32
    %14 = vector.broadcast %cst_8 : f32 to vector<32x1xf32>
    %15 = arith.addf %13, %14 : vector<32x1xf32>
    %16 = math.rsqrt %15 : vector<32x1xf32>
    %17 = vector.broadcast %16 : vector<32x1xf32> to vector<32x128xf32>
    %18 = arith.mulf %8, %17 : vector<32x128xf32>
    %19 = vector.broadcast %1 : vector<1x128xf32> to vector<32x128xf32>
    %20 = arith.mulf %18, %19 : vector<32x128xf32>
    %21 = vector.broadcast %2 : vector<1x128xf32> to vector<32x128xf32>
    %22 = arith.addf %20, %21 : vector<32x128xf32>
    %23 = arith.truncf %22 : vector<32x128xf32> to vector<32x128xbf16>
    %c0_9 = arith.constant 0 : index
    %c0_10 = arith.constant 0 : index
    %24 = vector.load %arg4[%c0_9, %c0_10] : memref<128x128xbf16, #tpu.memory_space<vmem>>, vector<128x128xbf16>
    %cst_11 = arith.constant dense<0.000000e+00> : vector<32x128xf32>
    %25 = tpu.matmul %23, %24, %cst_11 {dimension_numbers = #tpu.dot_dimension_numbers<[1], [0], [0], [1], [0, 0, 1, 1], [], []>} : vector<32x128xbf16>, vector<128x128xbf16>, vector<32x128xf32> -> vector<32x128xf32>
    %c0_12 = arith.constant 0 : index
    %c0_13 = arith.constant 0 : index
    %26 = vector.load %arg5[%c0_12, %c0_13] : memref<32x128xf32, #tpu.memory_space<vmem>>, vector<32x128xf32>
    tpu.vector_store %arg5[%c0_12, %c0_13], %25 {strides = array<i32>} : memref<32x128xf32, #tpu.memory_space<vmem>>, vector<32x128xf32>,
    return
  }
  func.func @transform_0(%arg0: i32) -> (i32, i32) {
    %c0_i32 = arith.constant 0 : i32
    %c0_i32_0 = arith.constant 0 : i32
    return %arg0, %c0_i32 : i32, i32
  }
  func.func @transform_1(%arg0: i32) -> (i32, i32) {
    %c0_i32 = arith.constant 0 : i32
    %c0_i32_0 = arith.constant 0 : i32
    %c0_i32_1 = arith.constant 0 : i32
    return %c0_i32, %c0_i32_0 : i32, i32
  }
  func.func @transform_2(%arg0: i32) -> (i32, i32) {
    %c0_i32 = arith.constant 0 : i32
    %c0_i32_0 = arith.constant 0 : i32
    %c0_i32_1 = arith.constant 0 : i32
    return %c0_i32, %c0_i32_0 : i32, i32
  }
  func.func @transform_3(%arg0: i32) -> (i32, i32) {
    %c0_i32 = arith.constant 0 : i32
    %c0_i32_0 = arith.constant 0 : i32
    %c0_i32_1 = arith.constant 0 : i32
    return %c0_i32, %c0_i32_0 : i32, i32
  }
  func.func @transform_4(%arg0: i32) -> (i32, i32) {
    %c0_i32 = arith.constant 0 : i32
    %c0_i32_0 = arith.constant 0 : i32
    return %arg0, %c0_i32 : i32, i32
  }
}

</mosaic_0001>

<bundles_post_ra>
// kernel: tpu_custom_call.1
= control target key start
LH: loop header
LB: loop body
LE: loop exit
PB: predicated region body
PF: predicated region fallthrough
CT: control target
= control target key end

     0   :  { %9 = vsyncpa [#allocation3], 0  ;;  %s470_s0 = inlined_call_operand.hbm [shape: f32[32,128], index: 0, kind: input, shape index: {}]   ;;  %s471_s1 = inlined_call_operand.vmem [shape: f32[1,128], index: 1, kind: input, shape index: {}]   ;;  %s472_s2 = inlined_call_operand.vmem [shape: f32[1,128], index: 2, kind: input, shape index: {}]   ;;  %s473_s3 = inlined_call_operand.hbm [shape: bf16[128,128], index: 3, kind: input, shape index: {}]   ;;  %s474_s4 = inlined_call_operand.hbm [shape: f32[32,128], index: 4, kind: output, shape index: {}]  }
   0x1   :  { %10 = vsyncpa [#allocation6], 0 }
   0x2   :  { %11 = vsyncpa [#allocation4], 0  ;;  %s390_s15 = smov [#allocation2]   ;;  %s318_s19 = scalar_lea.hbm %s470_s0, 512 }
   0x3   :  { %s17_s16 = sshll.u32 %s390_s15, 4  ;;  %p319_p0 = scmp.ne.s32.totalorder %s470_s0, %s318_s19  ;;  %s18_s16 = int_to_ptr.vmem [resolvable:$true] %s17_s16 }
   0x4   :  { %p322_p1 = scmp.lt.u32.totalorder %s318_s19, %s470_s0 }
   0x6   :  { %p324_p2 = pnand %p322_p1, %p319_p0 }
   0x8   :  { %327 = shalt.err (!%p324_p2)
}
   0x9   :  { %s328_s24 = scalar_lea.vmem %s18_s16, 512  ;;  %p333_p4 = scmp.lt.s32.totalorder %s18_s16, %s18_s16 }
   0xa   :  { %p329_p3 = scmp.ne.s32.totalorder %s18_s16, %s328_s24  ;;  %p334_p5 = scmp.lt.s32.totalorder %s328_s24, %s328_s24 }
   0xc   :  { %p335_p6 = por %p334_p5, %p333_p4 }
   0xe   :  { %p336_p7 = pnand %p335_p6, %p329_p3 }
  0x10   :  { %339 = shalt.err (!%p336_p7)
}
  0x11   :  { %s391_s25 = smov 128   ;;  %s392_s26 = smov 8  }
  0x12   :  { %23 = dma.hbm_to_vmem [thread:$0]  %s470_s0, 512, %s18_s16, [#allocation3], %s391_s25, %s391_s25, %s392_s26  }
  0x13   :  { %s393_s29 = smov [#allocation5]   ;;  %s340_s7 = scalar_lea.hbm %s473_s3, 1024 }
  0x14   :  { %s33_s30 = sshll.u32 %s393_s29, 4  ;;  %p341_p8 = scmp.ne.s32.totalorder %s473_s3, %s340_s7  ;;  %s34_s30 = int_to_ptr.vmem [resolvable:$true] %s33_s30 }
  0x15   :  { %p344_p9 = scmp.lt.u32.totalorder %s340_s7, %s473_s3 }
  0x17   :  { %p346_p10 = pnand %p344_p9, %p341_p8 }
  0x19   :  { %349 = shalt.err (!%p346_p10)
}
  0x1a   :  { %s350_s12 = scalar_lea.vmem %s34_s30, 1024  ;;  %p355_p12 = scmp.lt.s32.totalorder %s34_s30, %s34_s30 }
  0x1b   :  { %p351_p11 = scmp.ne.s32.totalorder %s34_s30, %s350_s12  ;;  %p356_p13 = scmp.lt.s32.totalorder %s350_s12, %s350_s12 }
  0x1d   :  { %p357_p0 = por %p356_p13, %p355_p12 }
  0x1f   :  { %p358_p1 = pnand %p357_p0, %p351_p11 }
  0x21   :  { %361 = shalt.err (!%p358_p1)
}
  0x22   :  { %s394_s0 = smov 64   ;;  %s395_s13 = smov 4  }
  0x23   :  { %39 = dma.hbm_to_vmem [thread:$0]  %s473_s3, 1024, %s34_s30, [#allocation6], %s394_s0, %s394_s0, %s395_s13  }
  0x24   :  { %384 = dma.done.wait [#allocation3], 512  }
  0x25   :  { %385 = vsyncadd [#allocation3], 4294966784 }
  0x26   :  { %386 = dma.done.wait [#allocation6], 1024  }
  0x27   :  { %387 = vsyncadd [#allocation6], 4294966272  ;;  %v47_v0 = vld [vmem:[#allocation2] sm:$0xff]  ;;  %v49_v1 = vld [vmem:[#allocation2 + $0x10] sm:$0xff] }
  0x28   :  { %v48_v2 = vld [vmem:[#allocation2 + $0x8] sm:$0xff]  ;;  %53 = vadd.xlane.f32.xlu0 %v47_v0  ;;  %57 = vadd.xlane.f32.xlu1 %v49_v1  ;;  %v50_v3 = vld [vmem:[#allocation2 + $0x18] sm:$0xff]  ;;  %v302_v4 = vld [vmem:[#allocation5] sm:$0xff]  }
  0x29   :  { %275 = vmatprep.subr.bf16.mxu0 %v302_v4  ;;  %v303_v21 = vld [vmem:[#allocation5 + $0x8] sm:$0xff]   ;;  %v304_v22 = vld [vmem:[#allocation5 + $0x10] sm:$0xff]   ;;  %v305_v23 = vld [vmem:[#allocation5 + $0x18] sm:$0xff]  }
  0x2a   :  { %276 = vmatpush3.bf16.msra.mxu0 %v302_v4  ;;  %v306_v24 = vld [vmem:[#allocation5 + $0x20] sm:$0xff]   ;;  %v307_v25 = vld [vmem:[#allocation5 + $0x28] sm:$0xff]   ;;  %v308_v26 = vld [vmem:[#allocation5 + $0x30] sm:$0xff]  }
  0x2b   :  { %277 = vmatprep.subr.bf16.mxu0 %v303_v21  ;;  %v309_v27 = vld [vmem:[#allocation5 + $0x38] sm:$0xff]   ;;  %v255_v42 = vld [vmem:[%s471_s1] ss:$0 sm:$0xff]  ;;  %s396_s1 = smov [#allocation7]  }
  0x2c   :  { %55 = vadd.xlane.f32.xlu0 %v48_v2  ;;  %59 = vadd.xlane.f32.xlu1 %v50_v3  ;;  %v256_v47 = vld [vmem:[%s472_s2] ss:$0 sm:$0xff]  ;;  %s242_s19 = sshll.u32 %s396_s1, 4  ;;  %s243_s19 = int_to_ptr.vmem [resolvable:$true] %s242_s19 }
  0x2d   :  { %s362_s2 = scalar_lea.vmem %s243_s19, 512  ;;  %p367_p3 = scmp.lt.s32.totalorder %s243_s19, %s243_s19 }
  0x2e   :  { %278 = vmatpush3.bf16.msra.mxu0 %v303_v21  ;;  %p363_p2 = scmp.ne.s32.totalorder %s243_s19, %s362_s2  ;;  %p368_p4 = scmp.lt.s32.totalorder %s362_s2, %s362_s2 }
  0x2f   :  { %279 = vmatprep.subr.bf16.mxu0 %v304_v22 }
  0x30   :  { %p369_p5 = por %p368_p4, %p367_p3 }
  0x32   :  { %280 = vmatpush3.bf16.msra.mxu0 %v304_v22  ;;  %p370_p6 = pnand %p369_p5, %p363_p2 }
  0x33   :  { %281 = vmatprep.subr.bf16.mxu0 %v305_v23 }
  0x36   :  { %282 = vmatpush3.bf16.msra.mxu0 %v305_v23 }
  0x37   :  { %283 = vmatprep.subr.bf16.mxu0 %v306_v24 }
  0x3a   :  { %284 = vmatpush3.bf16.msra.mxu0 %v306_v24 }
  0x3b   :  { %285 = vmatprep.subr.bf16.mxu0 %v307_v25 }
  0x3e   :  { %286 = vmatpush3.bf16.msra.mxu0 %v307_v25 }
  0x3f   :  { %287 = vmatprep.subr.bf16.mxu0 %v308_v26 }
  0x42   :  { %288 = vmatpush3.bf16.msra.mxu0 %v308_v26 }
  0x43   :  { %289 = vmatprep.subr.bf16.mxu0 %v309_v27 }
  0x46   :  { %290 = vmatpush3.bf16.msra.mxu0 %v309_v27 }
  0xb5   :  { %v54_v5 = vpop.xlane.xlu0 %53  ;;  %v58_v6 = vpop.xlane.xlu1 %57 }
  0xb6   :  { %v62_v7 = vmul.f32 0.0078125, %v54_v5  ;;  %v64_v8 = vmul.f32 0.0078125, %v58_v6 }
  0xb8   :  { %v66_v9 = vsub.f32 %v47_v0, %v62_v7  ;;  %v68_v10 = vsub.f32 %v49_v1, %v64_v8 }
  0xb9   :  { %v56_v11 = vpop.xlane.xlu0 %55  ;;  %v60_v12 = vpop.xlane.xlu1 %59 }
  0xba   :  { %v63_v13 = vmul.f32 0.0078125, %v56_v11  ;;  %v70_v14 = vmul.f32 %v66_v9, %v66_v9  ;;  %v65_v15 = vmul.f32 0.0078125, %v60_v12  ;;  %v72_v18 = vmul.f32 %v68_v10, %v68_v10 }
  0xbc   :  { %v67_v16 = vsub.f32 %v48_v2, %v63_v13  ;;  %74 = vadd.xlane.f32.xlu0 %v70_v14  ;;  %v69_v17 = vsub.f32 %v50_v3, %v65_v15 }
  0xbe   :  { %v71_v19 = vmul.f32 %v67_v16, %v67_v16  ;;  %v73_v20 = vmul.f32 %v69_v17, %v69_v17 }
  0xc0   :  { %78 = vadd.xlane.f32.xlu0 %v72_v18  ;;  %76 = vadd.xlane.f32.xlu1 %v71_v19 }
  0xc4   :  { %80 = vadd.xlane.f32.xlu1 %v73_v20 }
 0x149   :  { %v75_v28 = vpop.xlane.xlu0 %74 }
 0x14a   :  { %v82_v29 = vmul.f32 0.0078125, %v75_v28 }
 0x14c   :  { %v86_v30 = vadd.f32 1e-05, %v82_v29 }
 0x14d   :  { %v77_v31 = vpop.xlane.xlu1 %76  ;;  %v79_v32 = vpop.xlane.xlu0 %78 }
 0x14e   :  { %310 = vrsqrt.f32 %v86_v30  ;;  %v83_v33 = vmul.f32 0.0078125, %v77_v31  ;;  %v84_v34 = vmul.f32 0.0078125, %v79_v32 }
 0x150   :  { %v87_v35 = vadd.f32 1e-05, %v83_v33  ;;  %v88_v36 = vadd.f32 1e-05, %v84_v34 }
 0x151   :  { %v81_v37 = vpop.xlane.xlu1 %80 }
 0x152   :  { %312 = vrsqrt.f32 %v87_v35  ;;  %v85_v38 = vmul.f32 0.0078125, %v81_v37 }
 0x153   :  { %314 = vrsqrt.f32 %v88_v36 }
 0x154   :  { %v89_v39 = vadd.f32 1e-05, %v85_v38 }
 0x156   :  { %316 = vrsqrt.f32 %v89_v39 }
 0x158   :  { %v311_v40 = vpop.eup %310 }
 0x159   :  { %v94_v41 = vmul.f32 %v311_v40, %v66_v9 }
 0x15b   :  { %v104_v46 = vmul.f32 %v255_v42, %v94_v41 }
 0x15c   :  { %v313_v43 = vpop.eup %312 }
 0x15d   :  { %v315_v44 = vpop.eup %314  ;;  %v95_v45 = vmul.f32 %v313_v43, %v67_v16  ;;  %v114_v51 = vadd.f32 %v256_v47, %v104_v46 }
 0x15e   :  { %v96_v48 = vmul.f32 %v315_v44, %v68_v10 }
 0x15f   :  { %v105_v49 = vmul.f32 %v255_v42, %v95_v45 }
 0x160   :  { %v317_v50 = vpop.eup %316  ;;  %v106_v54 = vmul.f32 %v255_v42, %v96_v48 }
 0x161   :  { %v115_v52 = vadd.f32 %v256_v47, %v105_v49  ;;  %v97_v53 = vmul.f32 %v317_v50, %v69_v17 }
 0x162   :  { %v116_v57 = vadd.f32 %v256_v47, %v106_v54 }
 0x163   :  { %v118_v55 = vpack.c.bf16 %v115_v52, %v114_v51  ;;  %v107_v56 = vmul.f32 %v255_v42, %v97_v53 }
 0x165   :  { %291 = vmatprep.mubr.bf16.mxu0 %v118_v55  ;;  %v117_v58 = vadd.f32 %v256_v47, %v107_v56 }
 0x167   :  { %v119_v59 = vpack.c.bf16 %v117_v58, %v116_v57 }
 0x169   :  { %292 = vmatmul.mubr.bf16.vlgmr.msra.gmra.mrb[0].mxu0 %v119_v59 }
 0x23c   :  { %v293_v60 = vpop.f32.mrb[0].mxu0 }
 0x23d   :  { %235 = vst [vmem:[#allocation7 + $0x10] sm:$0xff] %v293_v60  ;;  %v218_v61 = vpop.f32.mrb[1].mxu0 }
 0x23e   :  { %233 = vst [vmem:[#allocation7] sm:$0xff] %v218_v61  ;;  %v294_v62 = vpop.f32.mrb[2].mxu0 }
 0x23f   :  { %236 = vst [vmem:[#allocation7 + $0x18] sm:$0xff] %v294_v62  ;;  %v221_v63 = vpop.f32.mrb[3].mxu0 }
 0x240   :  { %234 = vst [vmem:[#allocation7 + $0x8] sm:$0xff] %v221_v63 }
 0x241   :  { %373 = shalt.err (!%p370_p6)
}
 0x242   :  { %s374_s22 = scalar_lea.hbm %s474_s4, 512 }
 0x243   :  { %p375_p7 = scmp.ne.s32.totalorder %s474_s4, %s374_s22  ;;  %p378_p8 = scmp.lt.u32.totalorder %s374_s22, %s474_s4 }
 0x245   :  { %p380_p9 = pnand %p378_p8, %p375_p7 }
 0x247   :  { %383 = shalt.err (!%p380_p9)
}
 0x248   :  { %248 = dma.vmem_to_hbm [thread:$0]  %s243_s19, 512, %s474_s4, [#allocation4], %s391_s25, %s391_s25, %s392_s26  }
 0x249   :  { %388 = dma.done.wait [#allocation4], 512  }
 0x24a   :  { %389 = vsyncadd [#allocation4], 4294966784 }
 0x24b   :  { %252 = vsyncpa [#allocation3], 1 }
 0x24c   :  { %253 = vsyncpa [#allocation6], 1 }
 0x24d   :  { %254 = vsyncpa [#allocation4], 1 }

</bundles_post_ra>
